<compile_context>
chip_gen: v7x
topology: tpu7x:2x2x1
jax: 0.10.0
libtpu: 0.0.40
codegen_flags: <defaults>
</compile_context>

<pallas_src>
import functools
import math

import jax
import jax.numpy as jnp
from jax.experimental import pallas as pl
from jax.experimental.pallas import tpu as pltpu


# ----------------------------- kernel helpers -----------------------------

def _layer_norm(x, gamma, beta, eps):
    # x: (L, E) f32, gamma/beta: (1, E) f32
    mu = jnp.mean(x, axis=-1, keepdims=True)
    xc = x - mu
    var = jnp.mean(xc * xc, axis=-1, keepdims=True)
    return xc * jax.lax.rsqrt(var + eps) * gamma + beta


def _ln_kernel(x_ref, g_ref, b_ref, out_ref, *, eps):
    # spectral_features is None path: output = norm1(rgb)
    x = x_ref[0].astype(jnp.float32)
    out_ref[0] = _layer_norm(x, g_ref[...], b_ref[...], eps).astype(out_ref.dtype)


def _kv_proj_kernel(spec_ref, ln2_g_ref, ln2_b_ref, wkv_ref, bkv_ref,
                    k_out_ref, v_out_ref, *, num_heads, eps):
    # LN2 in f32 on the VPU, fused K|V projection in bf16 on the MXU (f32 accumulate).
    y = spec_ref[0].astype(jnp.float32)                              # (Tkv, E)
    kv_in = _layer_norm(y, ln2_g_ref[...], ln2_b_ref[...], eps)
    kv = jnp.dot(kv_in.astype(jnp.bfloat16), wkv_ref[...],
                 preferred_element_type=jnp.float32) + bkv_ref[...]  # (Tkv, 2E) f32
    tkv, two_e = kv.shape
    e = two_e // 2
    dh = e // num_heads

    k = kv[:, :e]                                                    # (Tkv, E)
    v = kv[:, e:]                                                    # (Tkv, E)
    k_t = k.T                                                        # (E, Tkv) one transpose, amortized over all query tiles

    for h in range(num_heads):
        lo = h * dh
        k_out_ref[0, h] = k_t[lo:lo + dh, :].astype(k_out_ref.dtype)   # (Dh, Tkv)
        v_out_ref[0, h] = v[:, lo:lo + dh].astype(v_out_ref.dtype)     # (Tkv, Dh)


def _cross_attn_kernel(rgb_ref, k_ref, v_ref, ln1_g_ref, ln1_b_ref,
                       wq_ref, bq_ref, wo_ref, bo_ref, ln3_g_ref, ln3_b_ref,
                       out_ref, ctx_ref, *, num_heads, eps):
    x = rgb_ref[0].astype(jnp.float32)                               # (TQ, E)
    q_in = _layer_norm(x, ln1_g_ref[...], ln1_b_ref[...], eps)       # f32, also the residual

    # 1/sqrt(Dh) is folded into wq/bq in the wrapper (residual uses q_in, not q).
    q = jnp.dot(q_in.astype(jnp.bfloat16), wq_ref[...],
                preferred_element_type=jnp.float32) + bq_ref[...]    # (TQ, E) f32

    tq, e = q.shape
    dh = e // num_heads

    # Per-head attention: contiguous K/V head tiles, K already transposed (Dh, Lkv);
    # each head's context goes into the (TQ, E) VMEM scratch at a static lane offset.
    for h in range(num_heads):
        lo = h * dh
        qh = q[:, lo:lo + dh].astype(jnp.bfloat16)                   # (TQ, Dh)
        kh = k_ref[0, h]                                             # (Dh, Lkv) bf16
        vh = v_ref[0, h]                                             # (Lkv, Dh) bf16
        s = jnp.dot(qh, kh, preferred_element_type=jnp.float32)      # (TQ, Lkv) f32
        s = s - jnp.max(s, axis=-1, keepdims=True)
        p = jnp.exp(s)
        attn = p * pl.reciprocal(jnp.sum(p, axis=-1, keepdims=True), approx=True)
        ctx_ref[:, lo:lo + dh] = jnp.dot(attn.astype(jnp.bfloat16), vh,
                                         preferred_element_type=jnp.float32)

    fused = jnp.dot(ctx_ref[...].astype(jnp.bfloat16), wo_ref[...],
                    preferred_element_type=jnp.float32) + bo_ref[...]
    out = _layer_norm(fused + q_in, ln3_g_ref[...], ln3_b_ref[...], eps)
    out_ref[0] = out.astype(out_ref.dtype)


# ----------------------------- tiling / VMEM helpers -----------------------------

def _vmem_budget_bytes():
    """Generation-aware scoped-VMEM budget (~3/4 of physical, capped at 100 MiB)."""
    cap = 64 * 1024 * 1024  # conservative (v7x per-TensorCore) fallback
    try:
        info = pltpu.get_tpu_info()
        cap = int(getattr(info, "vmem_capacity_bytes", cap) or cap)
    except Exception:
        pass
    return min((cap * 3) // 4, 100 * 1024 * 1024)


def _pick_tile(n, max_rows, candidates=(1024, 512, 256, 128)):
    for c in candidates:
        if c <= max_rows and n >= c and n % c == 0:
            return c
    return n  # full-extent fallback (single block along this axis)


def _pick_tile_q(lq, lkv, e, budget):
    # Resident bytes that do not scale with tile_q: bf16 K/V (double-buffered) + bf16 weights.
    fixed = 8 * e * lkv + 8 * e * e + 4 * 1024 * 1024
    # Per-query-row bytes: f32 temps (q_in/q/ctx/fused/out) + f32 score/exp temps.
    per_row = 48 * e + 12 * max(lkv, 1)
    avail = max(budget - fixed, 1 * 1024 * 1024)
    return _pick_tile(lq, max(avail // per_row, 8))


def _pick_tile_kv(lkv, e, budget):
    fixed = 8 * e * e + 4 * 1024 * 1024            # bf16 (E, 2E) weight, double-buffered
    per_row = 40 * e                               # spectral/kv_in/kv f32 temps + bf16 K/V out
    avail = max(budget - fixed, 1 * 1024 * 1024)
    return _pick_tile(lkv, max(avail // per_row, 8),
                      candidates=(2048, 1024, 512, 256, 128))


# ----------------------------- wrapper -----------------------------

def cross_attention_fusion(rgb, spectral, params, *, num_heads=8, eps=1e-5):
    """Pallas equivalent of CrossAttentionFusion.forward(rgb_features, spectral_features)."""
    B, Lq, E = rgb.shape
    assert E % num_heads == 0
    dh = E // num_heads
    out_dtype = rgb.dtype
    f32, bf16 = jnp.float32, jnp.bfloat16

    vmem_budget = _vmem_budget_bytes()

    def row(v, n=E):
        return jnp.asarray(v, f32).reshape(1, n)

    def cp(sem):
        return pltpu.CompilerParams(dimension_semantics=sem,
                                    vmem_limit_bytes=int(vmem_budget))

    ln1_g, ln1_b = row(params["ln1_g"]), row(params["ln1_b"])

    if spectral is None:
        tile_q = _pick_tile(Lq, 4096)
        return pl.pallas_call(
            functools.partial(_ln_kernel, eps=eps),
            out_shape=jax.ShapeDtypeStruct((B, Lq, E), out_dtype),
            grid=(B, Lq // tile_q),
            in_specs=[
                pl.BlockSpec((1, tile_q, E), lambda b, t: (b, t, 0)),
                pl.BlockSpec((1, E), lambda b, t: (0, 0)),
                pl.BlockSpec((1, E), lambda b, t: (0, 0)),
            ],
            out_specs=pl.BlockSpec((1, tile_q, E), lambda b, t: (b, t, 0)),
            compiler_params=cp(("parallel", "parallel")),
        )(rgb, ln1_g, ln1_b)

    _, Lkv, _ = spectral.shape
    ln2_g, ln2_b = row(params["ln2_g"]), row(params["ln2_b"])
    ln3_g, ln3_b = row(params["ln3_g"]), row(params["ln3_b"])

    # bf16 weights (f32 accumulation in-kernel); fold softmax scale into wq/bq; fuse K|V.
    scale = 1.0 / math.sqrt(dh)
    wq = (jnp.asarray(params["wq"], f32) * scale).astype(bf16)
    bq = row(params["bq"]) * scale
    wo = jnp.asarray(params["wo"], f32).astype(bf16)
    bo = row(params["bo"])
    wkv = jnp.concatenate([jnp.asarray(params["wk"], f32),
                           jnp.asarray(params["wv"], f32)], axis=1).astype(bf16)  # (E, 2E)
    bkv = jnp.concatenate([row(params["bk"]), row(params["bv"])], axis=1)          # (1, 2E)

    # Kernel 1: LN2 + fused K/V projection, K emitted per-head pre-transposed, bf16.
    tile_kv = _pick_tile_kv(Lkv, E, vmem_budget)
    k_heads, v_heads = pl.pallas_call(
        functools.partial(_kv_proj_kernel, num_heads=num_heads, eps=eps),
        out_shape=(jax.ShapeDtypeStruct((B, num_heads, dh, Lkv), bf16),
                   jax.ShapeDtypeStruct((B, num_heads, Lkv, dh), bf16)),
        grid=(B, Lkv // tile_kv),
        in_specs=[
            pl.BlockSpec((1, tile_kv, E), lambda b, t: (b, t, 0)),
            pl.BlockSpec((1, E), lambda b, t: (0, 0)),
            pl.BlockSpec((1, E), lambda b, t: (0, 0)),
            pl.BlockSpec((E, 2 * E), lambda b, t: (0, 0)),
            pl.BlockSpec((1, 2 * E), lambda b, t: (0, 0)),
        ],
        out_specs=(pl.BlockSpec((1, num_heads, dh, tile_kv), lambda b, t: (b, 0, 0, t)),
                   pl.BlockSpec((1, num_heads, tile_kv, dh), lambda b, t: (b, 0, t, 0))),
        compiler_params=cp(("parallel", "parallel")),
    )(spectral, ln2_g, ln2_b, wkv, bkv)

    # Kernel 2: LN1 + Q proj + multi-head attention + out proj + residual + LN3.
    tile_q = _pick_tile_q(Lq, Lkv, E, vmem_budget)
    out = pl.pallas_call(
        functools.partial(_cross_attn_kernel, num_heads=num_heads, eps=eps),
        out_shape=jax.ShapeDtypeStruct((B, Lq, E), out_dtype),
        grid=(B, Lq // tile_q),
        in_specs=[
            pl.BlockSpec((1, tile_q, E), lambda b, qt: (b, qt, 0)),
            pl.BlockSpec((1, num_heads, dh, Lkv), lambda b, qt: (b, 0, 0, 0)),
            pl.BlockSpec((1, num_heads, Lkv, dh), lambda b, qt: (b, 0, 0, 0)),
            pl.BlockSpec((1, E), lambda b, qt: (0, 0)),   # ln1_g
            pl.BlockSpec((1, E), lambda b, qt: (0, 0)),   # ln1_b
            pl.BlockSpec((E, E), lambda b, qt: (0, 0)),   # wq (bf16, scale folded)
            pl.BlockSpec((1, E), lambda b, qt: (0, 0)),   # bq (scale folded)
            pl.BlockSpec((E, E), lambda b, qt: (0, 0)),   # wo (bf16)
            pl.BlockSpec((1, E), lambda b, qt: (0, 0)),   # bo
            pl.BlockSpec((1, E), lambda b, qt: (0, 0)),   # ln3_g
            pl.BlockSpec((1, E), lambda b, qt: (0, 0)),   # ln3_b
        ],
        out_specs=pl.BlockSpec((1, tile_q, E), lambda b, qt: (b, qt, 0)),
        scratch_shapes=[pltpu.VMEM((tile_q, E), jnp.float32)],   # per-head context slab
        compiler_params=cp(("parallel", "parallel")),
    )(rgb, k_heads, v_heads, ln1_g, ln1_b, wq, bq, wo, bo, ln3_g, ln3_b)
    return out


# ----------------------------- pure-JAX reference -----------------------------

def _ref_forward(rgb, spectral, p, *, num_heads=8, eps=1e-5):
    hp = jax.lax.Precision.HIGHEST

    def ln(x, g, b):
        mu = jnp.mean(x, axis=-1, keepdims=True)
        xc = x - mu
        var = jnp.mean(xc * xc, axis=-1, keepdims=True)
        return xc * jax.lax.rsqrt(var + eps) * g + b

    qn = ln(rgb.astype(jnp.float32), p["ln1_g"], p["ln1_b"])
    if spectral is None:
        return qn
    kvn = ln(spectral.astype(jnp.float32), p["ln2_g"], p["ln2_b"])
    q = jnp.einsum("ble,ef->blf", qn, p["wq"], precision=hp) + p["bq"]
    k = jnp.einsum("ble,ef->blf", kvn, p["wk"], precision=hp) + p["bk"]
    v = jnp.einsum("ble,ef->blf", kvn, p["wv"], precision=hp) + p["bv"]
    B, Lq, E = q.shape
    Lkv = k.shape[1]
    Dh = E // num_heads
    qh = q.reshape(B, Lq, num_heads, Dh)
    kh = k.reshape(B, Lkv, num_heads, Dh)
    vh = v.reshape(B, Lkv, num_heads, Dh)
    s = jnp.einsum("bqhd,bkhd->bhqk", qh, kh, precision=hp) / jnp.sqrt(jnp.float32(Dh))
    a = jax.nn.softmax(s, axis=-1)
    ctx = jnp.einsum("bhqk,bkhd->bqhd", a, vh, precision=hp).reshape(B, Lq, E)
    fused = jnp.einsum("ble,ef->blf", ctx, p["wo"], precision=hp) + p["bo"]
    return ln(fused + qn, p["ln3_g"], p["ln3_b"])


# ----------------------------- demo / test -----------------------------

if __name__ == "__main__":
    B, Lq, Lkv, E, H = 2, 8, 16, 32, 8
    keys = jax.random.split(jax.random.PRNGKey(0), 16)
    rgb = jax.random.normal(keys[0], (B, Lq, E), jnp.float32)
    spectral = jax.random.normal(keys[1], (B, Lkv, E), jnp.float32)

    wscale = 0.2
    params = dict(
        ln1_g=1.0 + 0.1 * jax.random.normal(keys[2], (E,), jnp.float32),
        ln1_b=0.1 * jax.random.normal(keys[3], (E,), jnp.float32),
        ln2_g=1.0 + 0.1 * jax.random.normal(keys[4], (E,), jnp.float32),
        ln2_b=0.1 * jax.random.normal(keys[5], (E,), jnp.float32),
        ln3_g=1.0 + 0.1 * jax.random.normal(keys[6], (E,), jnp.float32),
        ln3_b=0.1 * jax.random.normal(keys[7], (E,), jnp.float32),
        wq=wscale * jax.random.normal(keys[8], (E, E), jnp.float32),
        wk=wscale * jax.random.normal(keys[9], (E, E), jnp.float32),
        wv=wscale * jax.random.normal(keys[10], (E, E), jnp.float32),
        wo=wscale * jax.random.normal(keys[11], (E, E), jnp.float32),
        bq=0.1 * jax.random.normal(keys[12], (E,), jnp.float32),
        bk=0.1 * jax.random.normal(keys[13], (E,), jnp.float32),
        bv=0.1 * jax.random.normal(keys[14], (E,), jnp.float32),
        bo=0.1 * jax.random.normal(keys[15], (E,), jnp.float32),
    )

    # Full cross-attention fusion path.
    out = cross_attention_fusion(rgb, spectral, params, num_heads=H)
    out = jax.block_until_ready(out)
    ref = _ref_forward(rgb, spectral, params, num_heads=H)
    assert out.shape == ref.shape
    # Tolerance covers bf16 MXU operands (f32 accumulation) vs the f32 XLA reference.
    max_err = float(jnp.max(jnp.abs(out - ref)))
    assert jnp.allclose(out, ref, atol=7e-2, rtol=7e-2), max_err

    # spectral_features is None path: output == norm1(rgb).
    out_none = cross_attention_fusion(rgb, None, params, num_heads=H)
    out_none = jax.block_until_ready(out_none)
    ref_none = _ref_forward(rgb, None, params, num_heads=H)
    assert jnp.allclose(out_none, ref_none, atol=1e-4, rtol=1e-4)

    print("KERNEL_OK")
</pallas_src>

<mosaic_0001>
module attributes {stable_mosaic.version = 11 : i64} {
  func.func @_kv_proj_kernel(%arg0: i32, %arg1: i32, %arg2: memref<1x16x32xf32, #tpu.memory_space<vmem>>, %arg3: memref<1x32xf32, #tpu.memory_space<vmem>>, %arg4: memref<1x32xf32, #tpu.memory_space<vmem>>, %arg5: memref<32x64xbf16, #tpu.memory_space<vmem>>, %arg6: memref<1x64xf32, #tpu.memory_space<vmem>>, %arg7: memref<1x8x4x16xbf16, #tpu.memory_space<vmem>>, %arg8: memref<1x8x16x4xbf16, #tpu.memory_space<vmem>>) attributes {dimension_semantics = [#tpu.dimension_semantics<parallel>, #tpu.dimension_semantics<parallel>], iteration_bounds = array<i64: 2, 1>, scalar_prefetch = 0 : i64, scratch_operands = 0 : i64, tpu.core_type = #tpu.core_type<tc>, window_params = [{transform_indices = @transform_0, window_bounds = array<i64: 1, 16, 32>}, {pipeline_mode = #tpu.pipeline_mode<synchronous>, transform_indices = @transform_1, window_bounds = array<i64: 1, 32>}, {pipeline_mode = #tpu.pipeline_mode<synchronous>, transform_indices = @transform_2, window_bounds = array<i64: 1, 32>}, {pipeline_mode = #tpu.pipeline_mode<synchronous>, transform_indices = @transform_3, window_bounds = array<i64: 32, 64>}, {pipeline_mode = #tpu.pipeline_mode<synchronous>, transform_indices = @transform_4, window_bounds = array<i64: 1, 64>}, {transform_indices = @transform_5, window_bounds = array<i64: 1, 8, 4, 16>}, {transform_indices = @transform_6, window_bounds = array<i64: 1, 8, 16, 4>}]} {
    %c0 = arith.constant 0 : index
    %c0_0 = arith.constant 0 : index
    %c0_1 = arith.constant 0 : index
    %0 = vector.load %arg2[%c0, %c0_0, %c0_1] : memref<1x16x32xf32, #tpu.memory_space<vmem>>, vector<1x16x32xf32>
    %1 = vector.shape_cast %0 : vector<1x16x32xf32> to vector<16x32xf32>
    %c0_2 = arith.constant 0 : index
    %c0_3 = arith.constant 0 : index
    %2 = vector.load %arg3[%c0_2, %c0_3] : memref<1x32xf32, #tpu.memory_space<vmem>>, vector<1x32xf32>
    %c0_4 = arith.constant 0 : index
    %c0_5 = arith.constant 0 : index
    %3 = vector.load %arg4[%c0_4, %c0_5] : memref<1x32xf32, #tpu.memory_space<vmem>>, vector<1x32xf32>
    %cst = arith.constant dense<0.000000e+00> : vector<16xf32>
    %4 = vector.multi_reduction <add>, %1, %cst [1] : vector<16x32xf32> to vector<16xf32>
    %5 = vector.shape_cast %4 : vector<16xf32> to vector<16x1xf32>
    %cst_6 = arith.constant 3.200000e+01 : f32
    %6 = vector.broadcast %cst_6 : f32 to vector<16x1xf32>
    %7 = arith.divf %5, %6 : vector<16x1xf32>
    %8 = vector.broadcast %7 : vector<16x1xf32> to vector<16x32xf32>
    %9 = arith.subf %1, %8 : vector<16x32xf32>
    %10 = arith.mulf %9, %9 : vector<16x32xf32>
    %cst_7 = arith.constant dense<0.000000e+00> : vector<16xf32>
    %11 = vector.multi_reduction <add>, %10, %cst_7 [1] : vector<16x32xf32> to vector<16xf32>
    %12 = vector.shape_cast %11 : vector<16xf32> to vector<16x1xf32>
    %cst_8 = arith.constant 3.200000e+01 : f32
    %13 = vector.broadcast %cst_8 : f32 to vector<16x1xf32>
    %14 = arith.divf %12, %13 : vector<16x1xf32>
    %cst_9 = arith.constant 9.99999974E-6 : f32
    %15 = vector.broadcast %cst_9 : f32 to vector<16x1xf32>
    %16 = arith.addf %14, %15 : vector<16x1xf32>
    %17 = math.rsqrt %16 : vector<16x1xf32>
    %18 = vector.broadcast %17 : vector<16x1xf32> to vector<16x32xf32>
    %19 = arith.mulf %9, %18 : vector<16x32xf32>
    %20 = vector.broadcast %2 : vector<1x32xf32> to vector<16x32xf32>
    %21 = arith.mulf %19, %20 : vector<16x32xf32>
    %22 = vector.broadcast %3 : vector<1x32xf32> to vector<16x32xf32>
    %23 = arith.addf %21, %22 : vector<16x32xf32>
    %24 = arith.truncf %23 : vector<16x32xf32> to vector<16x32xbf16>
    %c0_10 = arith.constant 0 : index
    %c0_11 = arith.constant 0 : index
    %25 = vector.load %arg5[%c0_10, %c0_11] : memref<32x64xbf16, #tpu.memory_space<vmem>>, vector<32x64xbf16>
    %cst_12 = arith.constant dense<0.000000e+00> : vector<16x64xf32>
    %26 = tpu.matmul %24, %25, %cst_12 {dimension_numbers = #tpu.dot_dimension_numbers<[1], [0], [0], [1], [0, 0, 1, 1], [], []>} : vector<16x32xbf16>, vector<32x64xbf16>, vector<16x64xf32> -> vector<16x64xf32>
    %c0_13 = arith.constant 0 : index
    %c0_14 = arith.constant 0 : index
    %27 = vector.load %arg6[%c0_13, %c0_14] : memref<1x64xf32, #tpu.memory_space<vmem>>, vector<1x64xf32>
    %28 = vector.broadcast %27 : vector<1x64xf32> to vector<16x64xf32>
    %29 = arith.addf %26, %28 : vector<16x64xf32>
    %30 = vector.extract_strided_slice %29 {offsets = [0, 0], sizes = [16, 32], strides = [1, 1]} : vector<16x64xf32> to vector<16x32xf32>
    %31 = vector.extract_strided_slice %29 {offsets = [0, 32], sizes = [16, 32], strides = [1, 1]} : vector<16x64xf32> to vector<16x32xf32>
    %32 = tpu.transpose %30, [1, 0] : vector<16x32xf32> -> vector<32x16xf32>
    %33 = vector.extract_strided_slice %32 {offsets = [0, 0], sizes = [4, 16], strides = [1, 1]} : vector<32x16xf32> to vector<4x16xf32>
    %34 = arith.truncf %33 : vector<4x16xf32> to vector<4x16xbf16>
    %c0_15 = arith.constant 0 : index
    %c0_16 = arith.constant 0 : index
    %c0_17 = arith.constant 0 : index
    %c0_18 = arith.constant 0 : index
    %35 = vector.load %arg7[%c0_15, %c0_16, %c0_17, %c0_18] : memref<1x8x4x16xbf16, #tpu.memory_space<vmem>>, vector<1x1x4x16xbf16>
    %36 = vector.shape_cast %35 : vector<1x1x4x16xbf16> to vector<4x16xbf16>
    %37 = vector.shape_cast %34 : vector<4x16xbf16> to vector<1x1x4x16xbf16>
    tpu.vector_store %arg7[%c0_15, %c0_16, %c0_17, %c0_18], %37 {strides = array<i32>} : memref<1x8x4x16xbf16, #tpu.memory_space<vmem>>, vector<1x1x4x16xbf16>,
    %38 = vector.extract_strided_slice %31 {offsets = [0, 0], sizes = [16, 4], strides = [1, 1]} : vector<16x32xf32> to vector<16x4xf32>
    %39 = arith.truncf %38 : vector<16x4xf32> to vector<16x4xbf16>
    %c0_19 = arith.constant 0 : index
    %c0_20 = arith.constant 0 : index
    %c0_21 = arith.constant 0 : index
    %c0_22 = arith.constant 0 : index
    %40 = vector.load %arg8[%c0_19, %c0_20, %c0_21, %c0_22] : memref<1x8x16x4xbf16, #tpu.memory_space<vmem>>, vector<1x1x16x4xbf16>
    %41 = vector.shape_cast %40 : vector<1x1x16x4xbf16> to vector<16x4xbf16>
    %42 = vector.shape_cast %39 : vector<16x4xbf16> to vector<1x1x16x4xbf16>
    tpu.vector_store %arg8[%c0_19, %c0_20, %c0_21, %c0_22], %42 {strides = array<i32>} : memref<1x8x16x4xbf16, #tpu.memory_space<vmem>>, vector<1x1x16x4xbf16>,
    %43 = vector.extract_strided_slice %32 {offsets = [4, 0], sizes = [4, 16], strides = [1, 1]} : vector<32x16xf32> to vector<4x16xf32>
    %44 = arith.truncf %43 : vector<4x16xf32> to vector<4x16xbf16>
    %c0_23 = arith.constant 0 : index
    %c1 = arith.constant 1 : index
    %c0_24 = arith.constant 0 : index
    %c0_25 = arith.constant 0 : index
    %45 = vector.load %arg7[%c0_23, %c1, %c0_24, %c0_25] : memref<1x8x4x16xbf16, #tpu.memory_space<vmem>>, vector<1x1x4x16xbf16>
    %46 = vector.shape_cast %45 : vector<1x1x4x16xbf16> to vector<4x16xbf16>
    %47 = vector.shape_cast %44 : vector<4x16xbf16> to vector<1x1x4x16xbf16>
    tpu.vector_store %arg7[%c0_23, %c1, %c0_24, %c0_25], %47 {strides = array<i32>} : memref<1x8x4x16xbf16, #tpu.memory_space<vmem>>, vector<1x1x4x16xbf16>,
    %48 = vector.extract_strided_slice %31 {offsets = [0, 4], sizes = [16, 4], strides = [1, 1]} : vector<16x32xf32> to vector<16x4xf32>
    %49 = arith.truncf %48 : vector<16x4xf32> to vector<16x4xbf16>
    %c0_26 = arith.constant 0 : index
    %c1_27 = arith.constant 1 : index
    %c0_28 = arith.constant 0 : index
    %c0_29 = arith.constant 0 : index
    %50 = vector.load %arg8[%c0_26, %c1_27, %c0_28, %c0_29] : memref<1x8x16x4xbf16, #tpu.memory_space<vmem>>, vector<1x1x16x4xbf16>
    %51 = vector.shape_cast %50 : vector<1x1x16x4xbf16> to vector<16x4xbf16>
    %52 = vector.shape_cast %49 : vector<16x4xbf16> to vector<1x1x16x4xbf16>
    tpu.vector_store %arg8[%c0_26, %c1_27, %c0_28, %c0_29], %52 {strides = array<i32>} : memref<1x8x16x4xbf16, #tpu.memory_space<vmem>>, vector<1x1x16x4xbf16>,
    %53 = vector.extract_strided_slice %32 {offsets = [8, 0], sizes = [4, 16], strides = [1, 1]} : vector<32x16xf32> to vector<4x16xf32>
    %54 = arith.truncf %53 : vector<4x16xf32> to vector<4x16xbf16>
    %c0_30 = arith.constant 0 : index
    %c2 = arith.constant 2 : index
    %c0_31 = arith.constant 0 : index
    %c0_32 = arith.constant 0 : index
    %55 = vector.load %arg7[%c0_30, %c2, %c0_31, %c0_32] : memref<1x8x4x16xbf16, #tpu.memory_space<vmem>>, vector<1x1x4x16xbf16>
    %56 = vector.shape_cast %55 : vector<1x1x4x16xbf16> to vector<4x16xbf16>
    %57 = vector.shape_cast %54 : vector<4x16xbf16> to vector<1x1x4x16xbf16>
    tpu.vector_store %arg7[%c0_30, %c2, %c0_31, %c0_32], %57 {strides = array<i32>} : memref<1x8x4x16xbf16, #tpu.memory_space<vmem>>, vector<1x1x4x16xbf16>,
    %58 = vector.extract_strided_slice %31 {offsets = [0, 8], sizes = [16, 4], strides = [1, 1]} : vector<16x32xf32> to vector<16x4xf32>
    %59 = arith.truncf %58 : vector<16x4xf32> to vector<16x4xbf16>
    %c0_33 = arith.constant 0 : index
    %c2_34 = arith.constant 2 : index
    %c0_35 = arith.constant 0 : index
    %c0_36 = arith.constant 0 : index
    %60 = vector.load %arg8[%c0_33, %c2_34, %c0_35, %c0_36] : memref<1x8x16x4xbf16, #tpu.memory_space<vmem>>, vector<1x1x16x4xbf16>
    %61 = vector.shape_cast %60 : vector<1x1x16x4xbf16> to vector<16x4xbf16>
    %62 = vector.shape_cast %59 : vector<16x4xbf16> to vector<1x1x16x4xbf16>
    tpu.vector_store %arg8[%c0_33, %c2_34, %c0_35, %c0_36], %62 {strides = array<i32>} : memref<1x8x16x4xbf16, #tpu.memory_space<vmem>>, vector<1x1x16x4xbf16>,
    %63 = vector.extract_strided_slice %32 {offsets = [12, 0], sizes = [4, 16], strides = [1, 1]} : vector<32x16xf32> to vector<4x16xf32>
    %64 = arith.truncf %63 : vector<4x16xf32> to vector<4x16xbf16>
    %c0_37 = arith.constant 0 : index
    %c3 = arith.constant 3 : index
    %c0_38 = arith.constant 0 : index
    %c0_39 = arith.constant 0 : index
    %65 = vector.load %arg7[%c0_37, %c3, %c0_38, %c0_39] : memref<1x8x4x16xbf16, #tpu.memory_space<vmem>>, vector<1x1x4x16xbf16>
    %66 = vector.shape_cast %65 : vector<1x1x4x16xbf16> to vector<4x16xbf16>
    %67 = vector.shape_cast %64 : vector<4x16xbf16> to vector<1x1x4x16xbf16>
    tpu.vector_store %arg7[%c0_37, %c3, %c0_38, %c0_39], %67 {strides = array<i32>} : memref<1x8x4x16xbf16, #tpu.memory_space<vmem>>, vector<1x1x4x16xbf16>,
    %68 = vector.extract_strided_slice %31 {offsets = [0, 12], sizes = [16, 4], strides = [1, 1]} : vector<16x32xf32> to vector<16x4xf32>
    %69 = arith.truncf %68 : vector<16x4xf32> to vector<16x4xbf16>
    %c0_40 = arith.constant 0 : index
    %c3_41 = arith.constant 3 : index
    %c0_42 = arith.constant 0 : index
    %c0_43 = arith.constant 0 : index
    %70 = vector.load %arg8[%c0_40, %c3_41, %c0_42, %c0_43] : memref<1x8x16x4xbf16, #tpu.memory_space<vmem>>, vector<1x1x16x4xbf16>
    %71 = vector.shape_cast %70 : vector<1x1x16x4xbf16> to vector<16x4xbf16>
    %72 = vector.shape_cast %69 : vector<16x4xbf16> to vector<1x1x16x4xbf16>
    tpu.vector_store %arg8[%c0_40, %c3_41, %c0_42, %c0_43], %72 {strides = array<i32>} : memref<1x8x16x4xbf16, #tpu.memory_space<vmem>>, vector<1x1x16x4xbf16>,
    %73 = vector.extract_strided_slice %32 {offsets = [16, 0], sizes = [4, 16], strides = [1, 1]} : vector<32x16xf32> to vector<4x16xf32>
    %74 = arith.truncf %73 : vector<4x16xf32> to vector<4x16xbf16>
    %c0_44 = arith.constant 0 : index
    %c4 = arith.constant 4 : index
    %c0_45 = arith.constant 0 : index
    %c0_46 = arith.constant 0 : index
    %75 = vector.load %arg7[%c0_44, %c4, %c0_45, %c0_46] : memref<1x8x4x16xbf16, #tpu.memory_space<vmem>>, vector<1x1x4x16xbf16>
    %76 = vector.shape_cast %75 : vector<1x1x4x16xbf16> to vector<4x16xbf16>
    %77 = vector.shape_cast %74 : vector<4x16xbf16> to vector<1x1x4x16xbf16>
    tpu.vector_store %arg7[%c0_44, %c4, %c0_45, %c0_46], %77 {strides = array<i32>} : memref<1x8x4x16xbf16, #tpu.memory_space<vmem>>, vector<1x1x4x16xbf16>,
    %78 = vector.extract_strided_slice %31 {offsets = [0, 16], sizes = [16, 4], strides = [1, 1]} : vector<16x32xf32> to vector<16x4xf32>
    %79 = arith.truncf %78 : vector<16x4xf32> to vector<16x4xbf16>
    %c0_47 = arith.constant 0 : index
    %c4_48 = arith.constant 4 : index
    %c0_49 = arith.constant 0 : index
    %c0_50 = arith.constant 0 : index
    %80 = vector.load %arg8[%c0_47, %c4_48, %c0_49, %c0_50] : memref<1x8x16x4xbf16, #tpu.memory_space<vmem>>, vector<1x1x16x4xbf16>
    %81 = vector.shape_cast %80 : vector<1x1x16x4xbf16> to vector<16x4xbf16>
    %82 = vector.shape_cast %79 : vector<16x4xbf16> to vector<1x1x16x4xbf16>
    tpu.vector_store %arg8[%c0_47, %c4_48, %c0_49, %c0_50], %82 {strides = array<i32>} : memref<1x8x16x4xbf16, #tpu.memory_space<vmem>>, vector<1x1x16x4xbf16>,
    %83 = vector.extract_strided_slice %32 {offsets = [20, 0], sizes = [4, 16], strides = [1, 1]} : vector<32x16xf32> to vector<4x16xf32>
    %84 = arith.truncf %83 : vector<4x16xf32> to vector<4x16xbf16>
    %c0_51 = arith.constant 0 : index
    %c5 = arith.constant 5 : index
    %c0_52 = arith.constant 0 : index
    %c0_53 = arith.constant 0 : index
    %85 = vector.load %arg7[%c0_51, %c5, %c0_52, %c0_53] : memref<1x8x4x16xbf16, #tpu.memory_space<vmem>>, vector<1x1x4x16xbf16>
    %86 = vector.shape_cast %85 : vector<1x1x4x16xbf16> to vector<4x16xbf16>
    %87 = vector.shape_cast %84 : vector<4x16xbf16> to vector<1x1x4x16xbf16>
    tpu.vector_store %arg7[%c0_51, %c5, %c0_52, %c0_53], %87 {strides = array<i32>} : memref<1x8x4x16xbf16, #tpu.memory_space<vmem>>, vector<1x1x4x16xbf16>,
    %88 = vector.extract_strided_slice %31 {offsets = [0, 20], sizes = [16, 4], strides = [1, 1]} : vector<16x32xf32> to vector<16x4xf32>
    %89 = arith.truncf %88 : vector<16x4xf32> to vector<16x4xbf16>
    %c0_54 = arith.constant 0 : index
    %c5_55 = arith.constant 5 : index
    %c0_56 = arith.constant 0 : index
    %c0_57 = arith.constant 0 : index
    %90 = vector.load %arg8[%c0_54, %c5_55, %c0_56, %c0_57] : memref<1x8x16x4xbf16, #tpu.memory_space<vmem>>, vector<1x1x16x4xbf16>
    %91 = vector.shape_cast %90 : vector<1x1x16x4xbf16> to vector<16x4xbf16>
    %92 = vector.shape_cast %89 : vector<16x4xbf16> to vector<1x1x16x4xbf16>
    tpu.vector_store %arg8[%c0_54, %c5_55, %c0_56, %c0_57], %92 {strides = array<i32>} : memref<1x8x16x4xbf16, #tpu.memory_space<vmem>>, vector<1x1x16x4xbf16>,
    %93 = vector.extract_strided_slice %32 {offsets = [24, 0], sizes = [4, 16], strides = [1, 1]} : vector<32x16xf32> to vector<4x16xf32>
    %94 = arith.truncf %93 : vector<4x16xf32> to vector<4x16xbf16>
    %c0_58 = arith.constant 0 : index
    %c6 = arith.constant 6 : index
    %c0_59 = arith.constant 0 : index
    %c0_60 = arith.constant 0 : index
    %95 = vector.load %arg7[%c0_58, %c6, %c0_59, %c0_60] : memref<1x8x4x16xbf16, #tpu.memory_space<vmem>>, vector<1x1x4x16xbf16>
    %96 = vector.shape_cast %95 : vector<1x1x4x16xbf16> to vector<4x16xbf16>
    %97 = vector.shape_cast %94 : vector<4x16xbf16> to vector<1x1x4x16xbf16>
    tpu.vector_store %arg7[%c0_58, %c6, %c0_59, %c0_60], %97 {strides = array<i32>} : memref<1x8x4x16xbf16, #tpu.memory_space<vmem>>, vector<1x1x4x16xbf16>,
    %98 = vector.extract_strided_slice %31 {offsets = [0, 24], sizes = [16, 4], strides = [1, 1]} : vector<16x32xf32> to vector<16x4xf32>
    %99 = arith.truncf %98 : vector<16x4xf32> to vector<16x4xbf16>
    %c0_61 = arith.constant 0 : index
    %c6_62 = arith.constant 6 : index
    %c0_63 = arith.constant 0 : index
    %c0_64 = arith.constant 0 : index
    %100 = vector.load %arg8[%c0_61, %c6_62, %c0_63, %c0_64] : memref<1x8x16x4xbf16, #tpu.memory_space<vmem>>, vector<1x1x16x4xbf16>
    %101 = vector.shape_cast %100 : vector<1x1x16x4xbf16> to vector<16x4xbf16>
    %102 = vector.shape_cast %99 : vector<16x4xbf16> to vector<1x1x16x4xbf16>
    tpu.vector_store %arg8[%c0_61, %c6_62, %c0_63, %c0_64], %102 {strides = array<i32>} : memref<1x8x16x4xbf16, #tpu.memory_space<vmem>>, vector<1x1x16x4xbf16>,
    %103 = vector.extract_strided_slice %32 {offsets = [28, 0], sizes = [4, 16], strides = [1, 1]} : vector<32x16xf32> to vector<4x16xf32>
    %104 = arith.truncf %103 : vector<4x16xf32> to vector<4x16xbf16>
    %c0_65 = arith.constant 0 : index
    %c7 = arith.constant 7 : index
    %c0_66 = arith.constant 0 : index
    %c0_67 = arith.constant 0 : index
    %105 = vector.load %arg7[%c0_65, %c7, %c0_66, %c0_67] : memref<1x8x4x16xbf16, #tpu.memory_space<vmem>>, vector<1x1x4x16xbf16>
    %106 = vector.shape_cast %105 : vector<1x1x4x16xbf16> to vector<4x16xbf16>
    %107 = vector.shape_cast %104 : vector<4x16xbf16> to vector<1x1x4x16xbf16>
    tpu.vector_store %arg7[%c0_65, %c7, %c0_66, %c0_67], %107 {strides = array<i32>} : memref<1x8x4x16xbf16, #tpu.memory_space<vmem>>, vector<1x1x4x16xbf16>,
    %108 = vector.extract_strided_slice %31 {offsets = [0, 28], sizes = [16, 4], strides = [1, 1]} : vector<16x32xf32> to vector<16x4xf32>
    %109 = arith.truncf %108 : vector<16x4xf32> to vector<16x4xbf16>
    %c0_68 = arith.constant 0 : index
    %c7_69 = arith.constant 7 : index
    %c0_70 = arith.constant 0 : index
    %c0_71 = arith.constant 0 : index
    %110 = vector.load %arg8[%c0_68, %c7_69, %c0_70, %c0_71] : memref<1x8x16x4xbf16, #tpu.memory_space<vmem>>, vector<1x1x16x4xbf16>
    %111 = vector.shape_cast %110 : vector<1x1x16x4xbf16> to vector<16x4xbf16>
    %112 = vector.shape_cast %109 : vector<16x4xbf16> to vector<1x1x16x4xbf16>
    tpu.vector_store %arg8[%c0_68, %c7_69, %c0_70, %c0_71], %112 {strides = array<i32>} : memref<1x8x16x4xbf16, #tpu.memory_space<vmem>>, vector<1x1x16x4xbf16>,
    return
  }
  func.func @transform_0(%arg0: i32, %arg1: i32) -> (i32, i32, i32) {
    %c0_i32 = arith.constant 0 : i32
    %c0_i32_0 = arith.constant 0 : i32
    return %arg0, %arg1, %c0_i32 : i32, i32, i32
  }
  func.func @transform_1(%arg0: i32, %arg1: i32) -> (i32, i32) {
    %c0_i32 = arith.constant 0 : i32
    %c0_i32_0 = arith.constant 0 : i32
    %c0_i32_1 = arith.constant 0 : i32
    return %c0_i32, %c0_i32_0 : i32, i32
  }
  func.func @transform_2(%arg0: i32, %arg1: i32) -> (i32, i32) {
    %c0_i32 = arith.constant 0 : i32
    %c0_i32_0 = arith.constant 0 : i32
    %c0_i32_1 = arith.constant 0 : i32
    return %c0_i32, %c0_i32_0 : i32, i32
  }
  func.func @transform_3(%arg0: i32, %arg1: i32) -> (i32, i32) {
    %c0_i32 = arith.constant 0 : i32
    %c0_i32_0 = arith.constant 0 : i32
    %c0_i32_1 = arith.constant 0 : i32
    return %c0_i32, %c0_i32_0 : i32, i32
  }
  func.func @transform_4(%arg0: i32, %arg1: i32) -> (i32, i32) {
    %c0_i32 = arith.constant 0 : i32
    %c0_i32_0 = arith.constant 0 : i32
    %c0_i32_1 = arith.constant 0 : i32
    return %c0_i32, %c0_i32_0 : i32, i32
  }
  func.func @transform_5(%arg0: i32, %arg1: i32) -> (i32, i32, i32, i32) {
    %c0_i32 = arith.constant 0 : i32
    %c0_i32_0 = arith.constant 0 : i32
    %c0_i32_1 = arith.constant 0 : i32
    return %arg0, %c0_i32, %c0_i32_0, %arg1 : i32, i32, i32, i32
  }
  func.func @transform_6(%arg0: i32, %arg1: i32) -> (i32, i32, i32, i32) {
    %c0_i32 = arith.constant 0 : i32
    %c0_i32_0 = arith.constant 0 : i32
    %c0_i32_1 = arith.constant 0 : i32
    return %arg0, %c0_i32, %arg1, %c0_i32_0 : i32, i32, i32, i32
  }
}

</mosaic_0001>

<bundles_post_ra>
// kernel: tpu_custom_call.1
= control target key start
LH: loop header
LB: loop body
LE: loop exit
PB: predicated region body
PF: predicated region fallthrough
CT: control target
= control target key end

     0   :  { %12 = vsyncpa [#allocation3], 0  ;;  %s1432_s0 = inlined_call_operand.hbm [shape: f32[2,16,32], index: 0, kind: input, shape index: {}]   ;;  %s1433_s1 = inlined_call_operand.vmem [shape: f32[1,32], index: 1, kind: input, shape index: {}]   ;;  %s1434_s2 = inlined_call_operand.vmem [shape: f32[1,32], index: 2, kind: input, shape index: {}]   ;;  %s1435_s3 = inlined_call_operand.hbm [shape: bf16[32,64], index: 3, kind: input, shape index: {}]   ;;  %s1436_s4 = inlined_call_operand.vmem [shape: f32[1,64], index: 4, kind: input, shape index: {}]   ;;  %s1437_s5 = inlined_call_operand.hbm [shape: bf16[2,8,4,16], index: 5, kind: output, shape index: {0}]   ;;  %s1438_s6 = inlined_call_operand.vmem [shape: bf16[2,8,16,4], index: 6, kind: output, shape index: {1}]  }
   0x1   :  { %14 = vsyncpa [#allocation3 + $0x1], 0 }
   0x2   :  { %15 = vsyncpa [#allocation6], 0 }
   0x3   :  { %16 = vsyncpa [#allocation4], 0 }
   0x4   :  { %18 = vsyncpa [#allocation4 + $0x1], 0  ;;  %s1137_s21 = smov 0   ;;  %s1139_s22 = smov 0  }
   0x5   :  { %s1141_s23 = smov 0   ;;  %s1143_s24 = smov 0  }
   0x6   :  { %s1145_s25 = smov 0   ;;  %s1147_s26 = smov 0  }
   0x7 LB: > { %s776_s27 = sadd.s32 4294967295, %s1080_s26   ;;  %s777_s28 = sadd.s32 4294967294, %s1080_s26   ;;  %s1080_s26 = sphi %s1147_s26, %s24_s26   ;;  %s1076_s25 = sphi %s1145_s25, %s1462_s25   ;;  %s1072_s24 = sphi %s1143_s24, %s1461_s24   ;;  %s1068_s23 = sphi %s1141_s23, %s1460_s23   ;;  %s1064_s22 = sphi %s1139_s22, %s1459_s22   ;;  %s1060_s21 = sphi %s1137_s21, %s1458_s21  }
   0x8   : > { %p58_p0 = scmp.ne.s32.totalorder %s1064_s22, %s1060_s21  ;;  %p1171_p1 = scmp.eq.s32.totalorder %s776_s27, 0 }
   0x9   : > { %p1175_p2 = scmp.eq.s32.totalorder %s776_s27, 1  ;;  %p174_p3 = scmp.eq.s32.totalorder %s777_s28, 1 }
   0xa   : > { %s1443_s29 = scalar_select %p1171_p1, 1, 0 }
   0xb   : > { %s1444_s30 = scalar_select %p1175_p2, 1, 0 }
   0xc   : > { %p1181_p4 = por %p1171_p1, %p58_p0  ;;  %p778_p5 = scmp.ge.s32.totalorder %s1080_s26, 1 }
   0xd   : > { %p1186_p6 = por %p174_p3, %p58_p0  ;;  %p209_p7 = scmp.lt.s32.totalorder %s1080_s26, 3 }
   0xe   : > { %s1445_s7 = scalar_select %p1181_p4, 1, 0 }
   0xf   : > { %s1446_s8 = scalar_select %p1186_p6, 1, 0 }
  0x10   : > { %p1191_p8 = pnand %p778_p5, %p209_p7  ;;  %s1082_s10 = smov [#allocation5]  }
  0x11   : > { %s227_s11 = sshll.u32 %s1082_s10, 4  ;;  %s36_s13 = sadd.s32 1, %s1076_s25  ;;  %s228_s11 = int_to_ptr.vmem [resolvable:$true] %s227_s11 }
  0x12   : > { %s1447_s9 = scalar_select %p1191_p8, 1, 0 }
  0x13   : > { %p848_p9 = pneg %p1191_p8  ;;  %s936_s16 = scalar_lea.hbm %s1435_s3, 256 }
  0x14   : > { %p937_p12 = scmp.ne.s32.totalorder %s1435_s3, %s936_s16  ;;  %p943_p5 = scmp.lt.u32.totalorder %s936_s16, %s1435_s3 }
  0x15   : > { %p1200_p11 = pnand %p848_p9, %p1171_p1 }
  0x17   : > { %p938_p13 = pneg %p1200_p11 }
  0x19   : > { %p939_p0 = pnand %p938_p13, %p937_p12 }
  0x1b   : > { %p940_p3 = pneg %p939_p0 }
  0x1d   : > { %p945_p7 = pnand %p943_p5, %p940_p3 }
  0x1f   : > { %948 = shalt.err (!%p945_p7)
}
  0x20   : > { %s949_s27 = scalar_lea.vmem %s228_s11, 256  ;;  %p957_p1 = scmp.lt.s32.totalorder %s228_s11, %s228_s11 }
  0x21   : > { %p950_p9 = scmp.ne.s32.totalorder %s228_s11, %s949_s27  ;;  %p958_p4 = scmp.lt.s32.totalorder %s949_s27, %s949_s27 }
  0x23   : > { %p952_p10 = pnand %p950_p9, %p938_p13  ;;  %p959_p8 = por %p958_p4, %p957_p1 }
  0x25   : > { %p953_p6 = pneg %p952_p10 }
  0x27   : > { %p960_p2 = pnand %p959_p8, %p953_p6 }
  0x29   : > { %963 = shalt.err (!%p960_p2)
}
  0x2a   : > { %s1083_s28 = smov 64   ;;  %s1084_s10 = smov 4  }
  0x2b   : > { %851 = dma.hbm_to_vmem [thread:$0]  (!%p1200_p11), %s1435_s3, 256, %s228_s11, [#allocation6], %s1083_s28, %s1083_s28, %s1084_s10  }
  0x2c   : > { %p38_p1 = scmp.ge.s32.totalorder %s36_s13, 2  ;;  %s45_s16 = sadd.s32 1, %s1068_s23 }
  0x2d   : > { %p52_p2 = scmp.ne.s32.totalorder %s1068_s23, %s1064_s22  ;;  %p53_p4 = scmp.eq.s32.totalorder %s1080_s26, 0 }
  0x2e   : > { %s1464_s13 = smov (%p38_p1, %s36_s13), 0  ;;  %p1450_p8 = scmp.ne.s32.totalorder %s1444_s30, 0 }
  0x2f   : > { %p1227_p6 = por %p53_p4, %p52_p2  ;;  %s40_s12 = ssub.s32 %s1076_s25, %s1464_s13 }
  0x30   : > { %p1233_p10 = por %p1450_p8, %p52_p2  ;;  %p861_p12 = scmp.lt.s32.totalorder %s1080_s26, 2 }
  0x31   : > { %p43_p11 = scmp.eq.s32.totalorder %s40_s12, 0  ;;  %s244_s11 = sand.u32 1, %s1068_s23  }
  0x32   : > { %s781_s19 = sshll.u32 %s244_s11, 4  ;;  %s824_s27 = sshll.u32 %s1076_s25, 8 }
  0x33   : > { %s1242_s20 = scalar_select %p43_p11, %s1068_s23, %s45_s16  }
  0x34   : > { %s1248_s14 = scalar_lea.hbm %s1432_s0, %s824_s27  ;;  %s248_s30 = scalar_lea.vmem [#allocation2], %s781_s19 }
  0x35   : > { %s257_s15 = sshll.u32 %s248_s30, 4  ;;  %p1254_p13 = pnand %p861_p12, %p1227_p6  ;;  %s1250_s15 = int_to_ptr.vmem [resolvable:$true] %s257_s15 }
  0x36   : > { %s1258_s16 = scalar_lea.sflag [#allocation3], %s244_s11  ;;  %s964_s28 = scalar_lea.hbm %s1248_s14, 256 }
  0x37   : > { %p965_p0 = scmp.ne.s32.totalorder %s1248_s14, %s964_s28  ;;  %p966_p3 = pneg %p1254_p13 }
  0x38   : > { %s969_s17 = scalar_lea.hbm %s1432_s0, 512  ;;  %p970_p9 = scmp.lt.u32.totalorder %s1248_s14, %s1432_s0 }
  0x39   : > { %p967_p5 = pnand %p966_p3, %p965_p0  ;;  %p971_p1 = scmp.lt.u32.totalorder %s969_s17, %s964_s28 }
  0x3a   : > { %p973_p4 = scmp.lt.u32.totalorder %s964_s28, %s1248_s14 }
  0x3b   : > { %p968_p7 = pneg %p967_p5  ;;  %p972_p2 = por %p971_p1, %p970_p9 }
  0x3d   : > { %p974_p6 = por %p973_p4, %p972_p2 }
  0x3f   : > { %p975_p8 = pnand %p974_p6, %p968_p7 }
  0x41   : > { %978 = shalt.err (!%p975_p8)
}
  0x42   : > { %s979_s11 = scalar_lea.vmem %s1250_s15, 256  ;;  %s1085_s19 = smov [#allocation2]  }
  0x43   : > { %p980_p12 = scmp.ne.s32.totalorder %s1250_s15, %s979_s11  ;;  %s984_s27 = sshll.u32 %s1085_s19, 4  ;;  %s985_s27 = int_to_ptr.vmem [resolvable:$false] %s984_s27 }
  0x44   : > { %s986_s10 = scalar_lea.vmem %s985_s27, 512  ;;  %p987_p5 = scmp.lt.s32.totalorder %s1250_s15, %s985_s27 }
  0x45   : > { %p982_p11 = pnand %p980_p12, %p966_p3  ;;  %p988_p9 = scmp.lt.s32.totalorder %s986_s10, %s979_s11 }
  0x47   : > { %p983_p0 = pneg %p982_p11  ;;  %p989_p1 = por %p988_p9, %p987_p5 }
  0x49   : > { %p990_p2 = pnand %p989_p1, %p983_p0 }
  0x4b   : > { %993 = shalt.err (!%p990_p2)
}
  0x4c   : > { %s1086_s28 = smov 128   ;;  %s1087_s17 = smov 8  }
  0x4d   : > { %855 = dma.hbm_to_vmem [thread:$0]  (!%p1254_p13), %s1248_s14, 256, %s1250_s15, %s1258_s16, %s1086_s28, %s1086_s28, %s1087_s17  }
  0x4e   : > { %p1453_p3 = scmp.ne.s32.totalorder %s1447_s9, 0 }
  0x4f   : > { %s1289_s30 = sand.u32 (!%p1453_p3), 1, %s1064_s22   ;;  %p1454_p7 = scmp.ne.s32.totalorder (!%p1453_p3), %s1445_s7, 0 }
  0x50   : > { %269 = sbr.rel (%p1453_p3) target bundleno = 808 (0x328), region = 40  ;;  %s785_s11 = sshll.u32 (!%p1453_p3), %s1289_s30, 4 }
  0x51   : > { %s272_s19 = scalar_lea.sflag (!%p1453_p3), [#allocation3], %s1289_s30  ;;  %s275_s27 = scalar_lea.vmem (!%p1453_p3), [#allocation2], %s785_s11 }
  0x57   : > { %1047 = dma.done.wait (%p1454_p7), %s272_s19, 256  }
  0x58   : > { %1049 = vsyncadd (%p1454_p7), %s272_s19, 4294967040  ;;  %p1455_p13 = scmp.ne.s32.totalorder %s1443_s29, 0 }
  0x5a   : > { %1051 = dma.done.wait (%p1455_p13), [#allocation6], 256  }
  0x5b   : > { %1053 = vsyncadd (%p1455_p13), [#allocation6], 4294967040  ;;  %vm333_vm0 = vcmask 261120   ;;  %v329_v0 = vld [vmem:[%s275_s27] sm:$0xff]  ;;  %v330_v1 = vld [vmem:[%s275_s27 + $0x8] sm:$0xff]  ;;  %v1088_v15 = vmov 0.0   ;;  %v499_v46 = vlaneseq }
  0x5c   : > { %v334_v2 = vsel %vm333_vm0, %v329_v0, 0.0  ;;  %v337_v3 = vsel %vm333_vm0, %v330_v1, 0.0  ;;  %v930_v14 = vld [vmem:[#allocation5] sm:$0xff]   ;;  %832 = vmatprep.subr.bf16.mxu0 %v1088_v15  ;;  %v931_v16 = vld [vmem:[#allocation5 + $0x8] sm:$0xff]   ;;  %vm1089_vm1 = vmmov 0   ;;  %s1090_s16 = smov 96  }
  0x5d   : > { %335 = vadd.xlane.f32.xlu0 %v334_v2  ;;  %833 = vmatpush3.bf16.msra.mxu0 %v930_v14  ;;  %v790_v25 = vld [vmem:[%s1433_s1] ss:$0 sm:$0xff]  ;;  %s1091_s10 = smov 92   ;;  %s1092_s28 = smov 88   ;;  %vm492_vm2 = vcmask 27648   ;;  %v500_v49 = vshrl.u32 %v499_v46, 7 }
  0x5e   : > { %836 = vmatprep.mubr.msk.bf16.mxu0 %vm1089_vm1, %v1088_v15  ;;  %834 = vmatprep.subr.bf16.mxu0 %v1088_v15  ;;  %v791_v29 = vld [vmem:[%s1434_s2] ss:$0 sm:$0xff]  ;;  %s1093_s17 = smov 84   ;;  %s1094_s19 = smov 80   ;;  %v1098_v44 = vmov 1983009808  }
  0x5f   : > { %v792_v34 = vld [vmem:[%s1436_s4] ss:$0 sm:$0xff]  ;;  %s1095_s27 = smov 76   ;;  %s1096_s29 = smov 72   ;;  %v497_v45 = vunpack.c.l.s4 %v1098_v44  ;;  %vm478_vm3 = vcmask 123904  }
  0x60   : > { %s1097_s7 = smov 68   ;;  %p319_p4 = scmp.lt.s32.totalorder %s1072_s24, 1 }
  0x61   : > { %338 = vadd.xlane.f32.xlu0 %v337_v3  ;;  %835 = vmatpush3.bf16.msra.mxu0 %v931_v16  ;;  %v498_v48 = vunpack.c.0.s8 %v497_v45 }
  0x62   : > { %s320_s9 = scalar_select %p319_p4, %s1072_s24, 1 }
  0x63   : > { %v501_v51 = vsub.s32 %v498_v48, %v500_v49 }
  0x64   : > { %s825_s14 = sshll.u32 %s320_s9, 6 }
  0xea   : > { %v336_v4 = vpop.xlane.xlu0 %335 }
  0xeb   : > { %v341_v5 = vmul.f32 0.03125, %v336_v4 }
  0xed   : > { %v343_v6 = vsub.f32 %v329_v0, %v341_v5 }
  0xee   : > { %v339_v7 = vpop.xlane.xlu0 %338 }
  0xef   : > { %v342_v8 = vmul.f32 0.03125, %v339_v7  ;;  %v345_v9 = vmul.f32 %v343_v6, %v343_v6 }
  0xf1   : > { %v344_v10 = vsub.f32 %v330_v1, %v342_v8  ;;  %v347_v11 = vsel %vm333_vm0, %v345_v9, 0.0 }
  0xf2   : > { %348 = vadd.xlane.f32.xlu1 %v347_v11 }
  0xf3   : > { %v346_v12 = vmul.f32 %v344_v10, %v344_v10 }
  0xf5   : > { %v350_v13 = vsel %vm333_vm0, %v346_v12, 0.0 }
  0xf6   : > { %351 = vadd.xlane.f32.xlu1 %v350_v13 }
 0x17f   : > { %v349_v17 = vpop.xlane.xlu1 %348 }
 0x180   : > { %v353_v18 = vmul.f32 0.03125, %v349_v17 }
 0x182   : > { %v355_v19 = vadd.f32 1e-05, %v353_v18 }
 0x183   : > { %v352_v20 = vpop.xlane.xlu1 %351 }
 0x184   : > { %932 = vrsqrt.f32 %v355_v19  ;;  %v354_v21 = vmul.f32 0.03125, %v352_v20 }
 0x186   : > { %v356_v22 = vadd.f32 1e-05, %v354_v21 }
 0x188   : > { %934 = vrsqrt.f32 %v356_v22 }
 0x18e   : > { %v933_v23 = vpop.eup %932 }
 0x18f   : > { %v359_v24 = vmul.f32 %v933_v23, %v343_v6 }
 0x191   : > { %v367_v28 = vmul.f32 %v790_v25, %v359_v24 }
 0x192   : > { %v935_v26 = vpop.eup %934 }
 0x193   : > { %v360_v27 = vmul.f32 %v935_v26, %v344_v10  ;;  %v375_v31 = vadd.f32 %v791_v29, %v367_v28 }
 0x195   : > { %v368_v30 = vmul.f32 %v790_v25, %v360_v27 }
 0x197   : > { %v376_v32 = vadd.f32 %v791_v29, %v368_v30 }
 0x199   : > { %v377_v33 = vpack.c.bf16 %v376_v32, %v375_v31 }
 0x19b   : > { %837 = vmatmul.mubr.msk.bf16.vlgmr.msra.gmra.mrb[0].mxu0 %vm333_vm0, %v377_v33 }
 0x26e   : > { %v438_v35 = vpop.f32.mrb[0].mxu0 }
 0x26f   : > { %v439_v36 = vadd.f32 %v792_v34, %v438_v35  ;;  %v838_v37 = vpop.f32.mrb[1].mxu0 }
 0x270   : > { %v441_v38 = vpop.f32.mrb[2].mxu0 }
 0x271   : > { %v826_v39 = vpack.c.bf16 %v439_v36, %v439_v36  ;;  %445 = vxpose.xlu0.b32.start [1/2] (short) (narrow) %v439_v36, 32  ;;  %v839_v40 = vpop.f32.mrb[3].mxu0  ;;  %v442_v41 = vadd.f32 %v792_v34, %v441_v38 }
 0x273   : > { %486 = vrot.lane.b32.xlu1 %v826_v39, %s1090_s16  ;;  %v827_v42 = vpack.c.bf16 %v442_v41, %v442_v41 }
 0x275   : > { %446 = vxpose.xlu0.b32.end [2/2] (short) (narrow) %v442_v41, 32 }
 0x277   : > { %507 = vrot.lane.b32.xlu1 %v826_v39, %s1091_s10 }
 0x27b   : > { %519 = vrot.lane.b32.xlu1 %v826_v39, %s1092_s28 }
 0x27f   : > { %540 = vrot.lane.b32.xlu1 %v826_v39, %s1093_s17 }
 0x283   : > { %552 = vrot.lane.b32.xlu1 %v826_v39, %s1094_s19 }
 0x287   : > { %488 = vrot.lane.b32.xlu1 %v827_v42, %s1090_s16  ;;  %s1322_s16 = scalar_lea.vmem %s1438_s6, %s825_s14 }
 0x28b   : > { %509 = vrot.lane.b32.xlu1 %v827_v42, %s1091_s10  ;;  %s1334_s10 = scalar_lea.vmem [#allocation7], %s785_s11  ;;  %s828_s11 = sshll.u32 %s1072_s24, 8 }
 0x28c   : > { %s616_s24 = scalar_lea.sflag [#allocation4], %s1289_s30 }
 0x28f   : > { %521 = vrot.lane.b32.xlu1 %v827_v42, %s1092_s28  ;;  %s639_s28 = sshll.u32 %s1334_s10, 4  ;;  %s1363_s28 = int_to_ptr.vmem [resolvable:$true] %s639_s28 }
 0x293   : > { %542 = vrot.lane.b32.xlu1 %v827_v42, %s1093_s17 }
 0x297   : > { %573 = vrot.lane.b32.xlu1 %v826_v39, %s1095_s27 }
 0x29b   : > { %585 = vrot.lane.b32.xlu1 %v826_v39, %s1096_s29 }
 0x29f   : > { %606 = vrot.lane.b32.xlu1 %v826_v39, %s1097_s7 }
 0x2a3   : > { %575 = vrot.lane.b32.xlu1 %v827_v42, %s1095_s27  ;;  %s1361_s27 = scalar_lea.hbm %s1437_s5, %s828_s11 }
 0x2a6   : > { %554 = vrot.lane.b32.xlu0 %v827_v42, %s1094_s19 }
 0x2a7   : > { %587 = vrot.lane.b32.xlu1 %v827_v42, %s1096_s29  ;;  %s994_s29 = scalar_lea.vmem %s1363_s28, 256 }
 0x2a8   : > { %p995_p6 = scmp.ne.s32.totalorder %s1363_s28, %s994_s29 }
 0x2aa   : > { %p996_p8 = pnand %p995_p6, %p1233_p10 }
 0x2ab   : > { %608 = vrot.lane.b32.xlu1 %v827_v42, %s1097_s7  ;;  %s1099_s7 = smov [#allocation7]  }
 0x2ac   : > { %p997_p12 = pneg %p996_p8  ;;  %s998_s9 = sshll.u32 %s1099_s7, 4  ;;  %s999_s9 = int_to_ptr.vmem [resolvable:$false] %s998_s9 }
 0x2ad   : > { %s1000_s14 = scalar_lea.vmem %s999_s9, 512  ;;  %p1001_p11 = scmp.lt.s32.totalorder %s1363_s28, %s999_s9 }
 0x2ae   : > { %p1002_p0 = scmp.lt.s32.totalorder %s1000_s14, %s994_s29 }
 0x2b0   : > { %p1003_p5 = por %p1002_p0, %p1001_p11 }
 0x2b2   : > { %p1004_p9 = pnand %p1003_p5, %p997_p12 }
 0x2e5   : > { %v487_v43 = vpop.permute.xlu1 %486 }
 0x2e6   : > { %493 = vst.msk [vmem:[%s1322_s16] sm:$0xf] %vm492_vm2, %v487_v43 }
 0x2e9   : > { %v508_v47 = vpop.permute.xlu1 %507 }
 0x2ea   : > { %799 = vst.msk [vmem:[%s1322_s16 + $0x8] sm:$0xf] %vm492_vm2, %v508_v47 }
 0x2ed   : > { %v520_v50 = vpop.permute.xlu1 %519 }
 0x2ee   : > { %802 = vst.msk [vmem:[%s1322_s16 + $0x10] sm:$0xf] %vm492_vm2, %v520_v50 }
 0x2f1   : > { %v541_v52 = vpop.permute.xlu1 %540  ;;  %v461_v53 = vpop.trf.xlu0 }
 0x2f2   : > { %805 = vst.msk [vmem:[%s1322_s16 + $0x18] sm:$0xf] %vm492_vm2, %v541_v52  ;;  %v477_v54 = vpack.c.bf16 %v461_v53, %v461_v53 }
 0x2f4   : > { %479 = vst.msk [vmem:[%s1334_s10] sm:$0x3] %vm478_vm3, %v477_v54  ;;  %v502_v55 = vrot.slane %v477_v54, %v501_v51 }
 0x2f5   : > { %v553_v56 = vpop.permute.xlu1 %552  ;;  %v462_v57 = vpop.trf.xlu0 }
 0x2f6   : > { %808 = vst.msk [vmem:[%s1322_s16 + $0x20] sm:$0xf] %vm492_vm2, %v553_v56  ;;  %v503_v58 = vcombine.high %v502_v55, %v502_v55  ;;  %v516_v59 = vpack.c.bf16 %v462_v57, %v462_v57 }
 0x2f8   : > { %798 = vst.msk [vmem:[%s1334_s10 + $0x2] sm:$0x3] %vm478_vm3, %v503_v58  ;;  %801 = vst.msk [vmem:[%s1334_s10 + $0x4] sm:$0x3] %vm478_vm3, %v516_v59  ;;  %v535_v60 = vrot.slane %v516_v59, %v501_v51 }
 0x2f9   : > { %v489_v61 = vpop.permute.xlu1 %488  ;;  %v463_v62 = vpop.trf.xlu0 }
 0x2fa   : > { %494 = vst.msk [vmem:[%s1322_s16 + $0x4] sm:$0xf] %vm492_vm2, %v489_v61  ;;  %v536_v63 = vcombine.high %v535_v60, %v535_v60  ;;  %v549_v0 = vpack.c.bf16 %v463_v62, %v463_v62 }
 0x2fc   : > { %804 = vst.msk [vmem:[%s1334_s10 + $0x6] sm:$0x3] %vm478_vm3, %v536_v63  ;;  %807 = vst.msk [vmem:[%s1334_s10 + $0x8] sm:$0x3] %vm478_vm3, %v549_v0  ;;  %v568_v1 = vrot.slane %v549_v0, %v501_v51 }
 0x2fd   : > { %v510_v2 = vpop.permute.xlu1 %509  ;;  %v464_v3 = vpop.trf.xlu0 }
 0x2fe   : > { %800 = vst.msk [vmem:[%s1322_s16 + $0xc] sm:$0xf] %vm492_vm2, %v510_v2  ;;  %v569_v4 = vcombine.high %v568_v1, %v568_v1  ;;  %v582_v5 = vpack.c.bf16 %v464_v3, %v464_v3 }
 0x300   : > { %810 = vst.msk [vmem:[%s1334_s10 + $0xa] sm:$0x3] %vm478_vm3, %v569_v4  ;;  %813 = vst.msk [vmem:[%s1334_s10 + $0xc] sm:$0x3] %vm478_vm3, %v582_v5  ;;  %v601_v6 = vrot.slane %v582_v5, %v501_v51 }
 0x301   : > { %v522_v7 = vpop.permute.xlu1 %521 }
 0x302   : > { %803 = vst.msk [vmem:[%s1322_s16 + $0x14] sm:$0xf] %vm492_vm2, %v522_v7  ;;  %v602_v8 = vcombine.high %v601_v6, %v601_v6 }
 0x304   : > { %816 = vst.msk [vmem:[%s1334_s10 + $0xe] sm:$0x3] %vm478_vm3, %v602_v8 }
 0x305   : > { %v543_v9 = vpop.permute.xlu1 %542 }
 0x306   : > { %1007 = shalt.err (!%p1004_p9)
}
 0x307   : > { %s1008_s15 = scalar_lea.hbm %s1361_s27, 256  ;;  %s1012_s11 = scalar_lea.hbm %s1437_s5, 512 }
 0x308   : > { %p1009_p1 = scmp.ne.s32.totalorder %s1361_s27, %s1008_s15  ;;  %p1013_p7 = scmp.lt.u32.totalorder %s1361_s27, %s1437_s5 }
 0x309   : > { %p1014_p13 = scmp.lt.u32.totalorder %s1012_s11, %s1008_s15  ;;  %p1016_p6 = scmp.lt.u32.totalorder %s1008_s15, %s1361_s27 }
 0x30a   : > { %p1010_p2 = pnand %p1009_p1, %p1233_p10 }
 0x30b   : > { %p1015_p4 = por %p1014_p13, %p1013_p7 }
 0x30c   : > { %p1011_p3 = pneg %p1010_p2 }
 0x30d   : > { %p1017_p8 = por %p1016_p6, %p1015_p4 }
 0x30f   : > { %p1018_p12 = pnand %p1017_p8, %p1011_p3 }
 0x311   : > { %1021 = shalt.err (!%p1018_p12)
}
 0x312   : > { %s1100_s29 = smov 32   ;;  %s1101_s7 = smov 2   ;;  %806 = vst.msk [vmem:[%s1322_s16 + $0x1c] sm:$0xf] %vm492_vm2, %v543_v9  ;;  %v574_v10 = vpop.permute.xlu1 %573 }
 0x313   : > { %846 = dma.vmem_to_hbm [thread:$0]  (%p1233_p10), %s1363_s28, 256, %s1361_s27, %s616_s24, %s1100_s29, %s1100_s29, %s1101_s7  }
 0x314   : > { %811 = vst.msk [vmem:[%s1322_s16 + $0x28] sm:$0xf] %vm492_vm2, %v574_v10 }
 0x316   : > { %v586_v11 = vpop.permute.xlu1 %585 }
 0x317   : > { %814 = vst.msk [vmem:[%s1322_s16 + $0x30] sm:$0xf] %vm492_vm2, %v586_v11 }
 0x318   : > { %v555_v14 = vpop.permute.xlu0 %554 }
 0x319   : > { %809 = vst.msk [vmem:[%s1322_s16 + $0x24] sm:$0xf] %vm492_vm2, %v555_v14 }
 0x31a   : > { %v607_v12 = vpop.permute.xlu1 %606 }
 0x31b   : > { %817 = vst.msk [vmem:[%s1322_s16 + $0x38] sm:$0xf] %vm492_vm2, %v607_v12 }
 0x31e   : > { %v576_v13 = vpop.permute.xlu1 %575 }
 0x31f   : > { %812 = vst.msk [vmem:[%s1322_s16 + $0x2c] sm:$0xf] %vm492_vm2, %v576_v13 }
 0x322   : > { %v588_v15 = vpop.permute.xlu1 %587 }
 0x323   : > { %815 = vst.msk [vmem:[%s1322_s16 + $0x34] sm:$0xf] %vm492_vm2, %v588_v15 }
 0x326   : > { %v609_v16 = vpop.permute.xlu1 %608 }
 0x327   : > { %818 = vst.msk [vmem:[%s1322_s16 + $0x3c] sm:$0xf] %vm492_vm2, %v609_v16 }
 0x328 PF: > { %s658_s18 = sand.u32 1, %s1060_s21   ;;  %p1456_p10 = scmp.ne.s32.totalorder %s1446_s8, 0 }
 0x329   : > { %p1457_p11 = scmp.ge.s32.totalorder %s1080_s26, 2  ;;  %s659_s30 = scalar_lea.sflag [#allocation4], %s658_s18 }
 0x32b   : > { %p857_p0 = pnand %p1457_p11, %p1456_p10 }
 0x32d   : > { %1055 = dma.done.wait (!%p857_p0), %s659_s30, 256  }
 0x32e   : > { %1057 = vsyncadd (!%p857_p0), %s659_s30, 4294967040  ;;  %s24_s26 = sadd.s32 1, %s1080_s26   ;;  %s1458_s21 = smov %s1064_s22 }
 0x32f   : > { %p21_p5 = scmp.ge.s32.totalorder %s24_s26, 4   ;;  %s1459_s22 = smov %s1068_s23 }
 0x330   : > { %s1460_s23 = smov %s1242_s20  ;;  %s1461_s24 = smov %s1076_s25 }
 0x331   : > { %s1462_s25 = smov %s1464_s13  ;;  %23 = sbr.rel (!%p21_p5) target bundleno = 7 (0x7), region = 115 }
 0x338   :  { %676 = vsyncpa [#allocation3], 1 }
 0x339   :  { %678 = vsyncpa [#allocation3 + $0x1], 1 }
 0x33a   :  { %679 = vsyncpa [#allocation6], 1 }
 0x33b   :  { %680 = vsyncpa [#allocation4], 1 }
 0x33c   :  { %682 = vsyncpa [#allocation4 + $0x1], 1 }

</bundles_post_ra>
